<compile_context>
chip_gen: v6e
topology: v6e:2x2x1
jax: 0.10.0
libtpu: 0.0.40
codegen_flags: <defaults>
</compile_context>

<pallas_src>
import functools

import jax
import jax.numpy as jnp
from jax import lax
from jax.experimental import pallas as pl
from jax.experimental.pallas import tpu as pltpu

NEG = -1.0e30  # "minus infinity" that stays finite in f32 arithmetic


def _round_up(x, m):
    return ((x + m - 1) // m) * m


def _bf16_transcendental_ok():
    # bf16 EUP/VPU exist on v6e / v7x; v5e and older must stay f32.
    try:
        kind = jax.devices()[0].device_kind.lower()
    except Exception:
        return False
    return ("v6" in kind) or ("v7" in kind)


# --------------------------------------------------------------------------
# Kernel 1: regularization reductions over flattened (T*N, C) rows
# --------------------------------------------------------------------------
def _reg_kernel(lp_ref, m_ref, out_ref, *, blank_id, need_entropy, need_blank,
                need_kl, need_conf, use_bf16_exp):
    # lp_ref : (Rt, C)  log-probabilities for Rt flattened (t, n) rows
    # m_ref  : (Rt, 2)  col 0 = length mask (t < input_length[n]; 0 on padded rows)
    #                   col 1 = row-valid   (1 on real rows, 0 on padded rows)
    # out_ref: (1, 8)   packed partial sums, accumulated across the row grid:
    #                   [entropy, exp(blank*mask), blank, kl, confidence, 0, 0, 0]
    @pl.when(pl.program_id(0) == 0)
    def _():
        out_ref[...] = jnp.zeros_like(out_ref)

    lp = lp_ref[...]
    m = m_ref[...]
    mask = m[:, 0:1]
    rowv = m[:, 1:2]
    zero1 = jnp.zeros((1, 1), jnp.float32)

    p = None
    if need_entropy or need_conf:
        if use_bf16_exp:
            # EUP-bound kernel: bf16 exp ~2x throughput on v6e/v7x; f32 accumulate
            p = jnp.exp(lp.astype(jnp.bfloat16)).astype(jnp.float32)
        else:
            p = jnp.exp(lp)

    # entropy: -sum_c p*logp, length-masked
    ent_s = zero1
    if need_entropy:
        ent = -jnp.sum(p * lp, axis=-1, keepdims=True)                   # (Rt, 1)
        ent_s = jnp.sum(ent * mask, axis=0, keepdims=True)               # (1, 1)

    # blank probability column (always needed: avg_blank_prob in the detail dict)
    pb = jnp.exp(lp[:, blank_id:blank_id + 1])                           # (Rt, 1)
    bsum_s = jnp.sum(pb * rowv, axis=0, keepdims=True)

    # blank penalty: exp(p_blank * mask) matches the torch module exactly
    # (masked-out real frames contribute exp(0)=1); padded rows are excluded
    # via the row-valid column.
    bexp_s = zero1
    if need_blank:
        bexp_s = jnp.sum(jnp.exp(pb * mask) * rowv, axis=0, keepdims=True)

    # label smoothing: sum_c (1/C)*(log(1/C) - lp) = log(1/C) - (1/C)*sum_c lp
    kl_s = zero1
    if need_kl:
        c = lp.shape[-1]
        kl = jnp.log(1.0 / c) - (1.0 / c) * jnp.sum(lp, axis=-1, keepdims=True)
        kl_s = jnp.sum(kl * mask, axis=0, keepdims=True)

    # confidence penalty: relu(masked max prob - 0.95)
    conf_s = zero1
    if need_conf:
        maxp = jnp.max(p, axis=-1, keepdims=True)
        conf_s = jnp.sum(jnp.maximum(maxp * mask - 0.95, 0.0), axis=0, keepdims=True)

    lane = lax.broadcasted_iota(jnp.int32, (1, 8), 1)
    out_ref[...] += (jnp.where(lane == 0, ent_s, 0.0) +
                     jnp.where(lane == 1, bexp_s, 0.0) +
                     jnp.where(lane == 2, bsum_s, 0.0) +
                     jnp.where(lane == 3, kl_s, 0.0) +
                     jnp.where(lane == 4, conf_s, 0.0))


def _reg_terms(log_probs, input_lengths, blank_id, *, need_entropy, need_blank,
               need_kl, need_conf):
    T, N, C = log_probs.shape
    R = T * N

    lp2 = log_probs.astype(jnp.float32).reshape(R, C)
    len_mask = (jnp.arange(T, dtype=jnp.int32)[:, None]
                < input_lengths.astype(jnp.int32)[None, :]).astype(jnp.float32)
    m2 = jnp.stack([len_mask.reshape(R), jnp.ones((R,), jnp.float32)], axis=-1)  # (R,2)

    # Row tile: ~2 MiB per block (pipelined / double-buffered), multiple of 8 sublanes.
    target_bytes = 2 * 1024 * 1024
    rt = max(8, min(_round_up(R, 8), (target_bytes // (C * 4)) // 8 * 8))
    Rpad = _round_up(R, rt)
    if Rpad != R:
        lp2 = jnp.pad(lp2, ((0, Rpad - R), (0, 0)))   # padded rows: lp = 0, masks = 0
        m2 = jnp.pad(m2, ((0, Rpad - R), (0, 0)))

    use_bf16_exp = _bf16_transcendental_ok() and (need_entropy or need_conf)

    vmem_limit = int(4 * rt * (C + 2) * 4 + (4 << 20))
    out = pl.pallas_call(
        functools.partial(_reg_kernel, blank_id=blank_id,
                          need_entropy=need_entropy, need_blank=need_blank,
                          need_kl=need_kl, need_conf=need_conf,
                          use_bf16_exp=use_bf16_exp),
        out_shape=jax.ShapeDtypeStruct((1, 8), jnp.float32),
        grid=(Rpad // rt,),
        in_specs=[pl.BlockSpec((rt, C), lambda i: (i, 0)),
                  pl.BlockSpec((rt, 2), lambda i: (i, 0))],
        out_specs=pl.BlockSpec((1, 8), lambda i: (0, 0)),
        compiler_params=pltpu.CompilerParams(
            dimension_semantics=("arbitrary",),
            vmem_limit_bytes=vmem_limit),
    )(lp2, m2)
    # ent_sum, bexp_sum, bsum, kl_sum, conf_sum
    return out[0, 0], out[0, 1], out[0, 2], out[0, 3], out[0, 4]


# --------------------------------------------------------------------------
# Kernel 2: CTC forward (alpha) dynamic program
# --------------------------------------------------------------------------
def _ctc_alpha_kernel(lp_ref, skip_ref, end_ref, il_ref, out_ref, alpha_ref):
    # grid = (batch blocks [parallel], time blocks [arbitrary, innermost])
    # lp_ref   : (Tt, Nb, S) log-probs gathered at the extended labels (time tile)
    # skip_ref : (Nb, S) additive mask: 0 where the s-2 "skip" transition is allowed
    # end_ref  : (Nb, S) additive mask: 0 at the two terminal states 2L-1, 2L
    # il_ref   : (Nb, 1) int32 input lengths
    # out_ref  : (Nb, 1) per-sample log-likelihood
    # alpha_ref: (Nb, S) running alpha (log space), persistent across time blocks
    tb = pl.program_id(1)
    Tt = lp_ref.shape[0]
    Nb, S = alpha_ref.shape

    iota_s = lax.broadcasted_iota(jnp.int32, (Nb, S), 1)

    @pl.when(tb == 0)
    def _():
        # t = 0: only s=0 (leading blank) and s=1 (first label) are reachable
        alpha_ref[...] = jnp.where(iota_s < 2, lp_ref[0], NEG)

    # loop-invariant values hoisted out of the serial time loop
    skip = skip_ref[...]
    il = il_ref[...]
    shift1 = jnp.where(iota_s >= 1, 0.0, NEG).astype(jnp.float32)   # blocks s-1 wrap
    t0 = tb * Tt

    def body(tt, prev):
        t = t0 + tt
        # alpha[s-1] / alpha[s-2] via single XLU lane rotations + additive NEG masks
        s1 = pltpu.roll(prev, shift=1, axis=1) + shift1
        s2 = pltpu.roll(prev, shift=2, axis=1) + skip   # skip is already NEG for s < 2
        m = jnp.maximum(jnp.maximum(prev, s1), s2)
        lse = m + jnp.log(jnp.exp(prev - m) + jnp.exp(s1 - m) + jnp.exp(s2 - m))
        new = lse + lp_ref[tt]
        # update only for 1 <= t < input_length[n]; afterwards alpha stays frozen at
        # the last valid frame so the terminal reduction can run once, after the loop
        upd = jnp.logical_and(t >= 1, t < il)           # (Nb, 1) broadcast over lanes
        return jnp.where(upd, new, prev)

    # alpha stays in the loop carry (vregs): one scratch read here, one write after
    if Tt % 8 == 0:
        unroll = 8
    elif Tt % 4 == 0:
        unroll = 4
    elif Tt % 2 == 0:
        unroll = 2
    else:
        unroll = 1
    alpha = lax.fori_loop(0, Tt, body, alpha_ref[...], unroll=unroll)
    alpha_ref[...] = alpha

    @pl.when(tb == pl.num_programs(1) - 1)
    def _():
        # terminal-state logsumexp (hoisted out of the per-timestep loop)
        masked = alpha + end_ref[...]
        mm = jnp.max(masked, axis=-1, keepdims=True)
        out_ref[...] = mm + jnp.log(
            jnp.sum(jnp.exp(masked - mm), axis=-1, keepdims=True))


def _pick_nb(N):
    """Batch width per block: wide (amortize the serial DP chain) but keep >=2
    'parallel' batch blocks on medium/large batches so both v7x TCs get work."""
    n8 = _round_up(max(int(N), 1), 8)
    if n8 <= 8:
        return 8
    if n8 >= 64:
        return 32
    return max(8, min(32, _round_up(n8 // 2, 8)))


def _ctc_per_sample_nll(log_probs, targets, input_lengths, target_lengths, blank_id,
                        max_target_length=None):
    T, N, C = log_probs.shape
    if max_target_length is None:
        # NOTE: forces a host sync; pass max_target_length explicitly under jit /
        # inside a training loop so S stays static and no recompiles happen.
        max_target_length = int(jax.device_get(jnp.max(target_lengths)))
    Lmax = max(int(max_target_length), 1)
    S = 2 * Lmax + 1

    tl = target_lengths.astype(jnp.int32)
    il = input_lengths.astype(jnp.int32)

    # rebuild per-batch padded targets from the flattened target tensor
    offsets = jnp.concatenate([jnp.zeros((1,), jnp.int32), jnp.cumsum(tl)[:-1]])
    l_idx = jnp.arange(Lmax, dtype=jnp.int32)
    gidx = jnp.clip(offsets[:, None] + l_idx[None, :], 0, targets.shape[0] - 1)
    valid = l_idx[None, :] < tl[:, None]
    targets_2d = jnp.where(valid, targets[gidx], blank_id).astype(jnp.int32)   # (N,Lmax)

    # extended label sequence: blank, y1, blank, y2, ..., yL, blank
    s_idx = jnp.arange(S, dtype=jnp.int32)
    is_label = (s_idx % 2) == 1
    lab_pos = jnp.clip((s_idx - 1) // 2, 0, Lmax - 1)
    ext = jnp.where(is_label[None, :], targets_2d[:, lab_pos], blank_id)       # (N, S)

    # gather log-probs at the extended labels with a one-hot matmul on the MXU
    # (fast, exact under HIGHEST precision) instead of a slow TPU gather.
    # TODO(synk): fuse this gather into the alpha kernel (stream (Tt,Nb,C) tiles and
    # do the batched one-hot matmul in-kernel) to also drop the (T,N,S) HBM round trip.
    one_hot = (ext[:, :, None] ==
               jnp.arange(C, dtype=jnp.int32)[None, None, :]).astype(jnp.float32)  # (N,S,C)
    lp_ext = jnp.einsum('tnc,nsc->tns', log_probs.astype(jnp.float32), one_hot,
                        precision=lax.Precision.HIGHEST)                       # (T,N,S)

    # skip transition allowed iff s>=2, ext[s] is a label, ext[s] != ext[s-2]
    prev2 = jnp.concatenate([jnp.full((N, 2), -1, jnp.int32), ext[:, :-2]], axis=1)
    skip_ok = (s_idx[None, :] >= 2) & is_label[None, :] & (ext != prev2)
    skip_add = jnp.where(skip_ok, 0.0, NEG).astype(jnp.float32)                # (N, S)

    # terminal states 2L-1 and 2L
    # TODO(synk): input_length == 0 falls back to a huge nll that zero_infinity
    # clears, rather than torch's exact behaviour.
    end_ok = ((s_idx[None, :] == (2 * tl - 1)[:, None]) |
              (s_idx[None, :] == (2 * tl)[:, None]))
    end_add = jnp.where(end_ok, 0.0, NEG).astype(jnp.float32)                  # (N, S)

    # ---- pad to TPU-friendly shapes: lanes S -> x128, sublanes N -> xNb, time -> xTt
    Nb = _pick_nb(N)
    S_pad = _round_up(S, 128)
    N_pad = _round_up(N, Nb)
    target_bytes = 2 * 1024 * 1024
    Tt = max(1, min(T, target_bytes // (Nb * S_pad * 4)))
    if Tt >= 8:
        Tt = (Tt // 8) * 8               # keep the in-kernel unroll factor clean
    T_pad = _round_up(T, Tt)

    lp_ext = jnp.pad(lp_ext, ((0, T_pad - T), (0, N_pad - N), (0, S_pad - S)))
    skip_add = jnp.pad(skip_add, ((0, N_pad - N), (0, S_pad - S)), constant_values=NEG)
    end_add = jnp.pad(end_add, ((0, N_pad - N), (0, S_pad - S)), constant_values=NEG)
    il_2d = jnp.pad(il.reshape(N, 1), ((0, N_pad - N), (0, 0)))  # padded rows: len 0

    # double-buffered lp tiles + small masks + alpha scratch; sized well under
    # v7x's 32 MiB scoped / 64 MiB physical VMEM.
    vmem_limit = int(2 * Tt * Nb * S_pad * 4 + 16 * Nb * S_pad * 4 + (8 << 20))
    vmem_limit = min(vmem_limit, 64 << 20)
    ll = pl.pallas_call(
        _ctc_alpha_kernel,
        out_shape=jax.ShapeDtypeStruct((N_pad, 1), jnp.float32),
        grid=(N_pad // Nb, T_pad // Tt),
        in_specs=[
            pl.BlockSpec((Tt, Nb, S_pad), lambda nb, tb: (tb, nb, 0)),
            pl.BlockSpec((Nb, S_pad), lambda nb, tb: (nb, 0)),
            pl.BlockSpec((Nb, S_pad), lambda nb, tb: (nb, 0)),
            pl.BlockSpec((Nb, 1), lambda nb, tb: (nb, 0)),
        ],
        out_specs=pl.BlockSpec((Nb, 1), lambda nb, tb: (nb, 0)),
        scratch_shapes=[pltpu.VMEM((Nb, S_pad), jnp.float32)],
        compiler_params=pltpu.CompilerParams(
            dimension_semantics=("parallel", "arbitrary"),
            vmem_limit_bytes=vmem_limit),
    )(lp_ext, skip_add, end_add, il_2d)
    return -ll[:N, 0]                                                          # (N,)


# --------------------------------------------------------------------------
# Full module-equivalent forward
# --------------------------------------------------------------------------
def ctc_loss_with_regularization(log_probs, targets, input_lengths, target_lengths,
                                 blank_id=0, zero_infinity=True,
                                 entropy_weight=0.01, blank_penalty=0.1,
                                 label_smoothing=0.0, confidence_penalty=0.0,
                                 blank_threshold=0.3, max_target_length=None):
    T, N, C = log_probs.shape

    # ---- CTC loss (torch 'mean' reduction: divide by target length, mean over batch)
    nll = _ctc_per_sample_nll(log_probs, targets, input_lengths, target_lengths,
                              blank_id, max_target_length)
    if zero_infinity:
        nll = jnp.where(jnp.isfinite(nll) & (nll < 1e29), nll, 0.0)
    ctc_loss = jnp.mean(nll / jnp.maximum(target_lengths.astype(jnp.float32), 1.0))

    # ---- regularization terms: statically gate unused work
    need_entropy = entropy_weight > 0
    need_blank = blank_penalty > 0
    need_kl = label_smoothing > 0
    need_conf = confidence_penalty > 0
    tn = float(T * N)
    zero = jnp.float32(0.0)

    if need_entropy or need_blank or need_kl or need_conf:
        ent_sum, bexp_sum, bsum, kl_sum, conf_sum = _reg_terms(
            log_probs, input_lengths, blank_id,
            need_entropy=need_entropy, need_blank=need_blank,
            need_kl=need_kl, need_conf=need_conf)
    else:
        # no regularizer: skip the Pallas pass; only avg_blank_prob is still reported
        bsum = jnp.sum(jnp.exp(log_probs[:, :, blank_id].astype(jnp.float32)))
        ent_sum = bexp_sum = kl_sum = conf_sum = zero

    entropy_loss = -(ent_sum / tn) if need_entropy else zero
    blank_penalty_loss = (bexp_sum / tn) * 100.0 if need_blank else zero
    label_smoothing_loss = (kl_sum / tn) if need_kl else zero
    confidence_penalty_loss = (conf_sum / tn) if need_conf else zero

    total_loss = (ctc_loss
                  + entropy_weight * entropy_loss
                  + blank_penalty * blank_penalty_loss
                  + label_smoothing * label_smoothing_loss
                  + confidence_penalty * confidence_penalty_loss)

    # detail dict kept as device scalars (no host syncs) so the whole loss is jit-able;
    # call float()/.item() on them host-side if needed.
    loss_details = {
        'ctc_loss': ctc_loss,
        'entropy_loss': entropy_loss,
        'blank_penalty': blank_penalty_loss,
        'label_smoothing_loss': label_smoothing_loss,
        'confidence_penalty': confidence_penalty_loss,
        'total_regularization': total_loss - ctc_loss,
        'avg_blank_prob': bsum / tn,
        'blank_threshold': blank_threshold,
        'blank_penalty_weight': blank_penalty,
        'entropy_weight': entropy_weight,
    }
    return total_loss, loss_details


# --------------------------------------------------------------------------
# Pure-JAX reference for the alpha DP (test-only, used in __main__)
# --------------------------------------------------------------------------
def _ctc_nll_reference(log_probs, targets, input_lengths, target_lengths, blank_id,
                       max_target_length):
    T, N, C = log_probs.shape
    Lmax = max(int(max_target_length), 1)
    S = 2 * Lmax + 1
    tl = target_lengths.astype(jnp.int32)

    offsets = jnp.concatenate([jnp.zeros((1,), jnp.int32), jnp.cumsum(tl)[:-1]])
    l_idx = jnp.arange(Lmax, dtype=jnp.int32)
    gidx = jnp.clip(offsets[:, None] + l_idx[None, :], 0, targets.shape[0] - 1)
    targets_2d = jnp.where(l_idx[None, :] < tl[:, None], targets[gidx], blank_id)
    s_idx = jnp.arange(S, dtype=jnp.int32)
    is_label = (s_idx % 2) == 1
    lab_pos = jnp.clip((s_idx - 1) // 2, 0, Lmax - 1)
    ext = jnp.where(is_label[None, :], targets_2d[:, lab_pos], blank_id)

    lp_ext = jnp.take_along_axis(log_probs.astype(jnp.float32),
                                 jnp.broadcast_to(ext[None], (T, N, S)), axis=2)
    prev2 = jnp.concatenate([jnp.full((N, 2), -1, jnp.int32), ext[:, :-2]], axis=1)
    skip = jnp.where((s_idx[None] >= 2) & is_label[None] & (ext != prev2), 0.0, NEG)
    alpha0 = jnp.where(s_idx[None, :] < 2, lp_ext[0], NEG)

    def step(alpha, inp):
        lp_t, t = inp
        s1 = jnp.where(s_idx[None] >= 1, jnp.roll(alpha, 1, axis=1), NEG)
        s2 = jnp.roll(alpha, 2, axis=1) + skip
        m = jnp.maximum(jnp.maximum(alpha, s1), s2)
        new = m + jnp.log(jnp.exp(alpha - m) + jnp.exp(s1 - m) + jnp.exp(s2 - m)) + lp_t
        upd = (t >= 1) & (t < input_lengths.astype(jnp.int32)[:, None])
        return jnp.where(upd, new, alpha), None

    alpha, _ = lax.scan(step, alpha0, (lp_ext, jnp.arange(T)))
    end = jnp.where((s_idx[None] == (2 * tl - 1)[:, None]) |
                    (s_idx[None] == (2 * tl)[:, None]), 0.0, NEG)
    masked = alpha + end
    mm = jnp.max(masked, axis=1)
    return -(mm + jnp.log(jnp.sum(jnp.exp(masked - mm[:, None]), axis=1)))


if __name__ == "__main__":
    key = jax.random.PRNGKey(0)
    T, N, C = 12, 2, 8                       # time, batch, classes (class 0 = blank)
    k1, k2 = jax.random.split(key)

    logits = jax.random.normal(k1, (T, N, C), dtype=jnp.float32)
    log_probs = jax.nn.log_softmax(logits, axis=-1)          # (T, N, C)

    target_lengths = jnp.array([4, 3], dtype=jnp.int32)      # (N,)
    input_lengths = jnp.array([12, 10], dtype=jnp.int32)     # (N,)
    total_targets = int(jnp.sum(target_lengths))
    targets = jax.random.randint(k2, (total_targets,), 1, C, dtype=jnp.int32)  # flattened
    Lmax = int(jnp.max(target_lengths))

    total, details = ctc_loss_with_regularization(
        log_probs, targets, input_lengths, target_lengths, max_target_length=Lmax)
    total = jax.block_until_ready(total)

    # sanity: Pallas alpha DP vs. plain-JAX scan reference
    nll_kernel = _ctc_per_sample_nll(log_probs, targets, input_lengths,
                                     target_lengths, 0, Lmax)
    nll_ref = _ctc_nll_reference(log_probs, targets, input_lengths,
                                 target_lengths, 0, Lmax)
    nll_kernel, nll_ref = jax.block_until_ready((nll_kernel, nll_ref))
    assert bool(jnp.all(jnp.abs(nll_kernel - nll_ref) < 1e-2)), (nll_kernel, nll_ref)
    assert bool(jnp.isfinite(total)), f"non-finite loss: {total}"
    print("KERNEL_OK")
</pallas_src>

<mosaic_0001>
module attributes {stable_mosaic.version = 11 : i64} {
  func.func @_ctc_alpha_kernel(%arg0: i32, %arg1: i32, %arg2: memref<8x8x128xf32, #tpu.memory_space<vmem>>, %arg3: memref<8x128xf32, #tpu.memory_space<vmem>>, %arg4: memref<8x128xf32, #tpu.memory_space<vmem>>, %arg5: memref<8x1xi32, #tpu.memory_space<vmem>>, %arg6: memref<8x1xf32, #tpu.memory_space<vmem>>, %arg7: memref<8x128xf32, #tpu.memory_space<vmem>>) attributes {dimension_semantics = [#tpu.dimension_semantics<parallel>, #tpu.dimension_semantics<arbitrary>], iteration_bounds = array<i64: 1, 2>, scalar_prefetch = 0 : i64, scratch_operands = 1 : i64, tpu.core_type = #tpu.core_type<tc>, window_params = [{transform_indices = @transform_0, window_bounds = array<i64: 8, 8, 128>}, {transform_indices = @transform_1, window_bounds = array<i64: 8, 128>}, {transform_indices = @transform_2, window_bounds = array<i64: 8, 128>}, {transform_indices = @transform_3, window_bounds = array<i64: 8, 1>}, {transform_indices = @transform_4, window_bounds = array<i64: 8, 1>}]} {
    %0 = tpu.iota {dimensions = array<i32: 1>} : vector<8x128xi32>
    %c0_i32 = arith.constant 0 : i32
    %1 = arith.cmpi eq, %arg1, %c0_i32 : i32
    %2 = arith.extui %1 : i1 to i32
    %c0_i32_0 = arith.constant 0 : i32
    %3 = arith.cmpi ne, %2, %c0_i32_0 : i32
    scf.if %3 {
      %c2_i32_54 = arith.constant 2 : i32
      %249 = vector.broadcast %c2_i32_54 : i32 to vector<8x128xi32>
      %250 = arith.cmpi slt, %0, %249 : vector<8x128xi32>
      %c0_55 = arith.constant 0 : index
      %c0_56 = arith.constant 0 : index
      %c0_57 = arith.constant 0 : index
      %251 = vector.load %arg2[%c0_55, %c0_56, %c0_57] : memref<8x8x128xf32, #tpu.memory_space<vmem>>, vector<1x8x128xf32>
      %252 = vector.shape_cast %251 : vector<1x8x128xf32> to vector<8x128xf32>
      %cst_58 = arith.constant -1.000000e+30 : f32
      %253 = vector.broadcast %cst_58 : f32 to vector<8x128xf32>
      %254 = arith.select %250, %252, %253 : vector<8x128xi1>, vector<8x128xf32>
      %c0_59 = arith.constant 0 : index
      %c0_60 = arith.constant 0 : index
      %255 = vector.load %arg7[%c0_59, %c0_60] : memref<8x128xf32, #tpu.memory_space<vmem>>, vector<8x128xf32>
      tpu.vector_store %arg7[%c0_59, %c0_60], %254 {strides = array<i32>} : memref<8x128xf32, #tpu.memory_space<vmem>>, vector<8x128xf32>,
    } else {
    }
    %c0 = arith.constant 0 : index
    %c0_1 = arith.constant 0 : index
    %4 = vector.load %arg3[%c0, %c0_1] : memref<8x128xf32, #tpu.memory_space<vmem>>, vector<8x128xf32>
    %c0_2 = arith.constant 0 : index
    %c0_3 = arith.constant 0 : index
    %5 = vector.load %arg5[%c0_2, %c0_3] : memref<8x1xi32, #tpu.memory_space<vmem>>, vector<8x1xi32>
    %c1_i32 = arith.constant 1 : i32
    %6 = vector.broadcast %c1_i32 : i32 to vector<8x128xi32>
    %7 = arith.cmpi sge, %0, %6 : vector<8x128xi32>
    %cst = arith.constant 0.000000e+00 : f32
    %cst_4 = arith.constant -1.000000e+30 : f32
    %8 = vector.broadcast %cst : f32 to vector<8x128xf32>
    %9 = vector.broadcast %cst_4 : f32 to vector<8x128xf32>
    %10 = arith.select %7, %8, %9 : vector<8x128xi1>, vector<8x128xf32>
    %c8_i32 = arith.constant 8 : i32
    %11 = arith.muli %arg1, %c8_i32 : i32
    %c0_5 = arith.constant 0 : index
    %c0_6 = arith.constant 0 : index
    %12 = vector.load %arg7[%c0_5, %c0_6] : memref<8x128xf32, #tpu.memory_space<vmem>>, vector<8x128xf32>
    %c0_i32_7 = arith.constant 0 : i32
    %13 = arith.addi %11, %c0_i32_7 : i32
    %c1_i32_8 = arith.constant 1 : i32
    %14 = tpu.dynamic_rotate %12 by %c1_i32_8 dim 1 : vector<8x128xf32>, i32 -> vector<8x128xf32>
    %15 = arith.addf %14, %10 : vector<8x128xf32>
    %c2_i32 = arith.constant 2 : i32
    %16 = tpu.dynamic_rotate %12 by %c2_i32 dim 1 : vector<8x128xf32>, i32 -> vector<8x128xf32>
    %17 = arith.addf %16, %4 : vector<8x128xf32>
    %18 = arith.maximumf %12, %15 : vector<8x128xf32>
    %19 = arith.maximumf %18, %17 : vector<8x128xf32>
    %20 = arith.subf %12, %19 : vector<8x128xf32>
    %21 = math.exp %20 : vector<8x128xf32>
    %22 = arith.subf %15, %19 : vector<8x128xf32>
    %23 = math.exp %22 : vector<8x128xf32>
    %24 = arith.addf %21, %23 : vector<8x128xf32>
    %25 = arith.subf %17, %19 : vector<8x128xf32>
    %26 = math.exp %25 : vector<8x128xf32>
    %27 = arith.addf %24, %26 : vector<8x128xf32>
    %28 = math.log %27 : vector<8x128xf32>
    %29 = arith.addf %19, %28 : vector<8x128xf32>
    %30 = arith.index_cast %c0_i32_7 : i32 to index
    %c0_9 = arith.constant 0 : index
    %c0_10 = arith.constant 0 : index
    %31 = vector.load %arg2[%30, %c0_9, %c0_10] : memref<8x8x128xf32, #tpu.memory_space<vmem>>, vector<1x8x128xf32>
    %32 = vector.shape_cast %31 : vector<1x8x128xf32> to vector<8x128xf32>
    %33 = arith.addf %29, %32 : vector<8x128xf32>
    %c1_i32_11 = arith.constant 1 : i32
    %34 = arith.cmpi sge, %13, %c1_i32_11 : i32
    %35 = vector.broadcast %13 : i32 to vector<8x1xi32>
    %36 = arith.cmpi slt, %35, %5 : vector<8x1xi32>
    %37 = vector.broadcast %34 : i1 to vector<8x1xi1>
    %38 = arith.andi %37, %36 : vector<8x1xi1>
    %39 = vector.shape_cast %38 : vector<8x1xi1> to vector<8x1xi1>
    %40 = vector.broadcast %39 : vector<8x1xi1> to vector<8x128xi1>
    %41 = arith.select %40, %33, %12 : vector<8x128xi1>, vector<8x128xf32>
    %c1_i32_12 = arith.constant 1 : i32
    %42 = arith.addi %11, %c1_i32_12 : i32
    %c1_i32_13 = arith.constant 1 : i32
    %43 = tpu.dynamic_rotate %41 by %c1_i32_13 dim 1 : vector<8x128xf32>, i32 -> vector<8x128xf32>
    %44 = arith.addf %43, %10 : vector<8x128xf32>
    %c2_i32_14 = arith.constant 2 : i32
    %45 = tpu.dynamic_rotate %41 by %c2_i32_14 dim 1 : vector<8x128xf32>, i32 -> vector<8x128xf32>
    %46 = arith.addf %45, %4 : vector<8x128xf32>
    %47 = arith.maximumf %41, %44 : vector<8x128xf32>
    %48 = arith.maximumf %47, %46 : vector<8x128xf32>
    %49 = arith.subf %41, %48 : vector<8x128xf32>
    %50 = math.exp %49 : vector<8x128xf32>
    %51 = arith.subf %44, %48 : vector<8x128xf32>
    %52 = math.exp %51 : vector<8x128xf32>
    %53 = arith.addf %50, %52 : vector<8x128xf32>
    %54 = arith.subf %46, %48 : vector<8x128xf32>
    %55 = math.exp %54 : vector<8x128xf32>
    %56 = arith.addf %53, %55 : vector<8x128xf32>
    %57 = math.log %56 : vector<8x128xf32>
    %58 = arith.addf %48, %57 : vector<8x128xf32>
    %59 = arith.index_cast %c1_i32_12 : i32 to index
    %c0_15 = arith.constant 0 : index
    %c0_16 = arith.constant 0 : index
    %60 = vector.load %arg2[%59, %c0_15, %c0_16] : memref<8x8x128xf32, #tpu.memory_space<vmem>>, vector<1x8x128xf32>
    %61 = vector.shape_cast %60 : vector<1x8x128xf32> to vector<8x128xf32>
    %62 = arith.addf %58, %61 : vector<8x128xf32>
    %c1_i32_17 = arith.constant 1 : i32
    %63 = arith.cmpi sge, %42, %c1_i32_17 : i32
    %64 = vector.broadcast %42 : i32 to vector<8x1xi32>
    %65 = arith.cmpi slt, %64, %5 : vector<8x1xi32>
    %66 = vector.broadcast %63 : i1 to vector<8x1xi1>
    %67 = arith.andi %66, %65 : vector<8x1xi1>
    %68 = vector.shape_cast %67 : vector<8x1xi1> to vector<8x1xi1>
    %69 = vector.broadcast %68 : vector<8x1xi1> to vector<8x128xi1>
    %70 = arith.select %69, %62, %41 : vector<8x128xi1>, vector<8x128xf32>
    %c2_i32_18 = arith.constant 2 : i32
    %71 = arith.addi %11, %c2_i32_18 : i32
    %c1_i32_19 = arith.constant 1 : i32
    %72 = tpu.dynamic_rotate %70 by %c1_i32_19 dim 1 : vector<8x128xf32>, i32 -> vector<8x128xf32>
    %73 = arith.addf %72, %10 : vector<8x128xf32>
    %c2_i32_20 = arith.constant 2 : i32
    %74 = tpu.dynamic_rotate %70 by %c2_i32_20 dim 1 : vector<8x128xf32>, i32 -> vector<8x128xf32>
    %75 = arith.addf %74, %4 : vector<8x128xf32>
    %76 = arith.maximumf %70, %73 : vector<8x128xf32>
    %77 = arith.maximumf %76, %75 : vector<8x128xf32>
    %78 = arith.subf %70, %77 : vector<8x128xf32>
    %79 = math.exp %78 : vector<8x128xf32>
    %80 = arith.subf %73, %77 : vector<8x128xf32>
    %81 = math.exp %80 : vector<8x128xf32>
    %82 = arith.addf %79, %81 : vector<8x128xf32>
    %83 = arith.subf %75, %77 : vector<8x128xf32>
    %84 = math.exp %83 : vector<8x128xf32>
    %85 = arith.addf %82, %84 : vector<8x128xf32>
    %86 = math.log %85 : vector<8x128xf32>
    %87 = arith.addf %77, %86 : vector<8x128xf32>
    %88 = arith.index_cast %c2_i32_18 : i32 to index
    %c0_21 = arith.constant 0 : index
    %c0_22 = arith.constant 0 : index
    %89 = vector.load %arg2[%88, %c0_21, %c0_22] : memref<8x8x128xf32, #tpu.memory_space<vmem>>, vector<1x8x128xf32>
    %90 = vector.shape_cast %89 : vector<1x8x128xf32> to vector<8x128xf32>
    %91 = arith.addf %87, %90 : vector<8x128xf32>
    %c1_i32_23 = arith.constant 1 : i32
    %92 = arith.cmpi sge, %71, %c1_i32_23 : i32
    %93 = vector.broadcast %71 : i32 to vector<8x1xi32>
    %94 = arith.cmpi slt, %93, %5 : vector<8x1xi32>
    %95 = vector.broadcast %92 : i1 to vector<8x1xi1>
    %96 = arith.andi %95, %94 : vector<8x1xi1>
    %97 = vector.shape_cast %96 : vector<8x1xi1> to vector<8x1xi1>
    %98 = vector.broadcast %97 : vector<8x1xi1> to vector<8x128xi1>
    %99 = arith.select %98, %91, %70 : vector<8x128xi1>, vector<8x128xf32>
    %c3_i32 = arith.constant 3 : i32
    %100 = arith.addi %11, %c3_i32 : i32
    %c1_i32_24 = arith.constant 1 : i32
    %101 = tpu.dynamic_rotate %99 by %c1_i32_24 dim 1 : vector<8x128xf32>, i32 -> vector<8x128xf32>
    %102 = arith.addf %101, %10 : vector<8x128xf32>
    %c2_i32_25 = arith.constant 2 : i32
    %103 = tpu.dynamic_rotate %99 by %c2_i32_25 dim 1 : vector<8x128xf32>, i32 -> vector<8x128xf32>
    %104 = arith.addf %103, %4 : vector<8x128xf32>
    %105 = arith.maximumf %99, %102 : vector<8x128xf32>
    %106 = arith.maximumf %105, %104 : vector<8x128xf32>
    %107 = arith.subf %99, %106 : vector<8x128xf32>
    %108 = math.exp %107 : vector<8x128xf32>
    %109 = arith.subf %102, %106 : vector<8x128xf32>
    %110 = math.exp %109 : vector<8x128xf32>
    %111 = arith.addf %108, %110 : vector<8x128xf32>
    %112 = arith.subf %104, %106 : vector<8x128xf32>
    %113 = math.exp %112 : vector<8x128xf32>
    %114 = arith.addf %111, %113 : vector<8x128xf32>
    %115 = math.log %114 : vector<8x128xf32>
    %116 = arith.addf %106, %115 : vector<8x128xf32>
    %117 = arith.index_cast %c3_i32 : i32 to index
    %c0_26 = arith.constant 0 : index
    %c0_27 = arith.constant 0 : index
    %118 = vector.load %arg2[%117, %c0_26, %c0_27] : memref<8x8x128xf32, #tpu.memory_space<vmem>>, vector<1x8x128xf32>
    %119 = vector.shape_cast %118 : vector<1x8x128xf32> to vector<8x128xf32>
    %120 = arith.addf %116, %119 : vector<8x128xf32>
    %c1_i32_28 = arith.constant 1 : i32
    %121 = arith.cmpi sge, %100, %c1_i32_28 : i32
    %122 = vector.broadcast %100 : i32 to vector<8x1xi32>
    %123 = arith.cmpi slt, %122, %5 : vector<8x1xi32>
    %124 = vector.broadcast %121 : i1 to vector<8x1xi1>
    %125 = arith.andi %124, %123 : vector<8x1xi1>
    %126 = vector.shape_cast %125 : vector<8x1xi1> to vector<8x1xi1>
    %127 = vector.broadcast %126 : vector<8x1xi1> to vector<8x128xi1>
    %128 = arith.select %127, %120, %99 : vector<8x128xi1>, vector<8x128xf32>
    %c4_i32 = arith.constant 4 : i32
    %129 = arith.addi %11, %c4_i32 : i32
    %c1_i32_29 = arith.constant 1 : i32
    %130 = tpu.dynamic_rotate %128 by %c1_i32_29 dim 1 : vector<8x128xf32>, i32 -> vector<8x128xf32>
    %131 = arith.addf %130, %10 : vector<8x128xf32>
    %c2_i32_30 = arith.constant 2 : i32
    %132 = tpu.dynamic_rotate %128 by %c2_i32_30 dim 1 : vector<8x128xf32>, i32 -> vector<8x128xf32>
    %133 = arith.addf %132, %4 : vector<8x128xf32>
    %134 = arith.maximumf %128, %131 : vector<8x128xf32>
    %135 = arith.maximumf %134, %133 : vector<8x128xf32>
    %136 = arith.subf %128, %135 : vector<8x128xf32>
    %137 = math.exp %136 : vector<8x128xf32>
    %138 = arith.subf %131, %135 : vector<8x128xf32>
    %139 = math.exp %138 : vector<8x128xf32>
    %140 = arith.addf %137, %139 : vector<8x128xf32>
    %141 = arith.subf %133, %135 : vector<8x128xf32>
    %142 = math.exp %141 : vector<8x128xf32>
    %143 = arith.addf %140, %142 : vector<8x128xf32>
    %144 = math.log %143 : vector<8x128xf32>
    %145 = arith.addf %135, %144 : vector<8x128xf32>
    %146 = arith.index_cast %c4_i32 : i32 to index
    %c0_31 = arith.constant 0 : index
    %c0_32 = arith.constant 0 : index
    %147 = vector.load %arg2[%146, %c0_31, %c0_32] : memref<8x8x128xf32, #tpu.memory_space<vmem>>, vector<1x8x128xf32>
    %148 = vector.shape_cast %147 : vector<1x8x128xf32> to vector<8x128xf32>
    %149 = arith.addf %145, %148 : vector<8x128xf32>
    %c1_i32_33 = arith.constant 1 : i32
    %150 = arith.cmpi sge, %129, %c1_i32_33 : i32
    %151 = vector.broadcast %129 : i32 to vector<8x1xi32>
    %152 = arith.cmpi slt, %151, %5 : vector<8x1xi32>
    %153 = vector.broadcast %150 : i1 to vector<8x1xi1>
    %154 = arith.andi %153, %152 : vector<8x1xi1>
    %155 = vector.shape_cast %154 : vector<8x1xi1> to vector<8x1xi1>
    %156 = vector.broadcast %155 : vector<8x1xi1> to vector<8x128xi1>
    %157 = arith.select %156, %149, %128 : vector<8x128xi1>, vector<8x128xf32>
    %c5_i32 = arith.constant 5 : i32
    %158 = arith.addi %11, %c5_i32 : i32
    %c1_i32_34 = arith.constant 1 : i32
    %159 = tpu.dynamic_rotate %157 by %c1_i32_34 dim 1 : vector<8x128xf32>, i32 -> vector<8x128xf32>
    %160 = arith.addf %159, %10 : vector<8x128xf32>
    %c2_i32_35 = arith.constant 2 : i32
    %161 = tpu.dynamic_rotate %157 by %c2_i32_35 dim 1 : vector<8x128xf32>, i32 -> vector<8x128xf32>
    %162 = arith.addf %161, %4 : vector<8x128xf32>
    %163 = arith.maximumf %157, %160 : vector<8x128xf32>
    %164 = arith.maximumf %163, %162 : vector<8x128xf32>
    %165 = arith.subf %157, %164 : vector<8x128xf32>
    %166 = math.exp %165 : vector<8x128xf32>
    %167 = arith.subf %160, %164 : vector<8x128xf32>
    %168 = math.exp %167 : vector<8x128xf32>
    %169 = arith.addf %166, %168 : vector<8x128xf32>
    %170 = arith.subf %162, %164 : vector<8x128xf32>
    %171 = math.exp %170 : vector<8x128xf32>
    %172 = arith.addf %169, %171 : vector<8x128xf32>
    %173 = math.log %172 : vector<8x128xf32>
    %174 = arith.addf %164, %173 : vector<8x128xf32>
    %175 = arith.index_cast %c5_i32 : i32 to index
    %c0_36 = arith.constant 0 : index
    %c0_37 = arith.constant 0 : index
    %176 = vector.load %arg2[%175, %c0_36, %c0_37] : memref<8x8x128xf32, #tpu.memory_space<vmem>>, vector<1x8x128xf32>
    %177 = vector.shape_cast %176 : vector<1x8x128xf32> to vector<8x128xf32>
    %178 = arith.addf %174, %177 : vector<8x128xf32>
    %c1_i32_38 = arith.constant 1 : i32
    %179 = arith.cmpi sge, %158, %c1_i32_38 : i32
    %180 = vector.broadcast %158 : i32 to vector<8x1xi32>
    %181 = arith.cmpi slt, %180, %5 : vector<8x1xi32>
    %182 = vector.broadcast %179 : i1 to vector<8x1xi1>
    %183 = arith.andi %182, %181 : vector<8x1xi1>
    %184 = vector.shape_cast %183 : vector<8x1xi1> to vector<8x1xi1>
    %185 = vector.broadcast %184 : vector<8x1xi1> to vector<8x128xi1>
    %186 = arith.select %185, %178, %157 : vector<8x128xi1>, vector<8x128xf32>
    %c6_i32 = arith.constant 6 : i32
    %187 = arith.addi %11, %c6_i32 : i32
    %c1_i32_39 = arith.constant 1 : i32
    %188 = tpu.dynamic_rotate %186 by %c1_i32_39 dim 1 : vector<8x128xf32>, i32 -> vector<8x128xf32>
    %189 = arith.addf %188, %10 : vector<8x128xf32>
    %c2_i32_40 = arith.constant 2 : i32
    %190 = tpu.dynamic_rotate %186 by %c2_i32_40 dim 1 : vector<8x128xf32>, i32 -> vector<8x128xf32>
    %191 = arith.addf %190, %4 : vector<8x128xf32>
    %192 = arith.maximumf %186, %189 : vector<8x128xf32>
    %193 = arith.maximumf %192, %191 : vector<8x128xf32>
    %194 = arith.subf %186, %193 : vector<8x128xf32>
    %195 = math.exp %194 : vector<8x128xf32>
    %196 = arith.subf %189, %193 : vector<8x128xf32>
    %197 = math.exp %196 : vector<8x128xf32>
    %198 = arith.addf %195, %197 : vector<8x128xf32>
    %199 = arith.subf %191, %193 : vector<8x128xf32>
    %200 = math.exp %199 : vector<8x128xf32>
    %201 = arith.addf %198, %200 : vector<8x128xf32>
    %202 = math.log %201 : vector<8x128xf32>
    %203 = arith.addf %193, %202 : vector<8x128xf32>
    %204 = arith.index_cast %c6_i32 : i32 to index
    %c0_41 = arith.constant 0 : index
    %c0_42 = arith.constant 0 : index
    %205 = vector.load %arg2[%204, %c0_41, %c0_42] : memref<8x8x128xf32, #tpu.memory_space<vmem>>, vector<1x8x128xf32>
    %206 = vector.shape_cast %205 : vector<1x8x128xf32> to vector<8x128xf32>
    %207 = arith.addf %203, %206 : vector<8x128xf32>
    %c1_i32_43 = arith.constant 1 : i32
    %208 = arith.cmpi sge, %187, %c1_i32_43 : i32
    %209 = vector.broadcast %187 : i32 to vector<8x1xi32>
    %210 = arith.cmpi slt, %209, %5 : vector<8x1xi32>
    %211 = vector.broadcast %208 : i1 to vector<8x1xi1>
    %212 = arith.andi %211, %210 : vector<8x1xi1>
    %213 = vector.shape_cast %212 : vector<8x1xi1> to vector<8x1xi1>
    %214 = vector.broadcast %213 : vector<8x1xi1> to vector<8x128xi1>
    %215 = arith.select %214, %207, %186 : vector<8x128xi1>, vector<8x128xf32>
    %c7_i32 = arith.constant 7 : i32
    %216 = arith.addi %11, %c7_i32 : i32
    %c1_i32_44 = arith.constant 1 : i32
    %217 = tpu.dynamic_rotate %215 by %c1_i32_44 dim 1 : vector<8x128xf32>, i32 -> vector<8x128xf32>
    %218 = arith.addf %217, %10 : vector<8x128xf32>
    %c2_i32_45 = arith.constant 2 : i32
    %219 = tpu.dynamic_rotate %215 by %c2_i32_45 dim 1 : vector<8x128xf32>, i32 -> vector<8x128xf32>
    %220 = arith.addf %219, %4 : vector<8x128xf32>
    %221 = arith.maximumf %215, %218 : vector<8x128xf32>
    %222 = arith.maximumf %221, %220 : vector<8x128xf32>
    %223 = arith.subf %215, %222 : vector<8x128xf32>
    %224 = math.exp %223 : vector<8x128xf32>
    %225 = arith.subf %218, %222 : vector<8x128xf32>
    %226 = math.exp %225 : vector<8x128xf32>
    %227 = arith.addf %224, %226 : vector<8x128xf32>
    %228 = arith.subf %220, %222 : vector<8x128xf32>
    %229 = math.exp %228 : vector<8x128xf32>
    %230 = arith.addf %227, %229 : vector<8x128xf32>
    %231 = math.log %230 : vector<8x128xf32>
    %232 = arith.addf %222, %231 : vector<8x128xf32>
    %233 = arith.index_cast %c7_i32 : i32 to index
    %c0_46 = arith.constant 0 : index
    %c0_47 = arith.constant 0 : index
    %234 = vector.load %arg2[%233, %c0_46, %c0_47] : memref<8x8x128xf32, #tpu.memory_space<vmem>>, vector<1x8x128xf32>
    %235 = vector.shape_cast %234 : vector<1x8x128xf32> to vector<8x128xf32>
    %236 = arith.addf %232, %235 : vector<8x128xf32>
    %c1_i32_48 = arith.constant 1 : i32
    %237 = arith.cmpi sge, %216, %c1_i32_48 : i32
    %238 = vector.broadcast %216 : i32 to vector<8x1xi32>
    %239 = arith.cmpi slt, %238, %5 : vector<8x1xi32>
    %240 = vector.broadcast %237 : i1 to vector<8x1xi1>
    %241 = arith.andi %240, %239 : vector<8x1xi1>
    %242 = vector.shape_cast %241 : vector<8x1xi1> to vector<8x1xi1>
    %243 = vector.broadcast %242 : vector<8x1xi1> to vector<8x128xi1>
    %244 = arith.select %243, %236, %215 : vector<8x128xi1>, vector<8x128xf32>
    %c8_i32_49 = arith.constant 8 : i32
    %c0_50 = arith.constant 0 : index
    %c0_51 = arith.constant 0 : index
    %245 = vector.load %arg7[%c0_50, %c0_51] : memref<8x128xf32, #tpu.memory_space<vmem>>, vector<8x128xf32>
    tpu.vector_store %arg7[%c0_50, %c0_51], %244 {strides = array<i32>} : memref<8x128xf32, #tpu.memory_space<vmem>>, vector<8x128xf32>,
    %c1_i32_52 = arith.constant 1 : i32
    %246 = arith.cmpi eq, %arg1, %c1_i32_52 : i32
    %247 = arith.extui %246 : i1 to i32
    %c0_i32_53 = arith.constant 0 : i32
    %248 = arith.cmpi ne, %247, %c0_i32_53 : i32
    scf.if %248 {
      %c0_54 = arith.constant 0 : index
      %c0_55 = arith.constant 0 : index
      %249 = vector.load %arg4[%c0_54, %c0_55] : memref<8x128xf32, #tpu.memory_space<vmem>>, vector<8x128xf32>
      %250 = arith.addf %244, %249 : vector<8x128xf32>
      %cst_56 = arith.constant dense<0xFF800000> : vector<8xf32>
      %251 = vector.multi_reduction <maximumf>, %250, %cst_56 [1] : vector<8x128xf32> to vector<8xf32>
      %252 = vector.shape_cast %251 : vector<8xf32> to vector<8x1xf32>
      %253 = vector.broadcast %252 : vector<8x1xf32> to vector<8x128xf32>
      %254 = arith.subf %250, %253 : vector<8x128xf32>
      %255 = math.exp %254 : vector<8x128xf32>
      %cst_57 = arith.constant dense<0.000000e+00> : vector<8xf32>
      %256 = vector.multi_reduction <add>, %255, %cst_57 [1] : vector<8x128xf32> to vector<8xf32>
      %257 = vector.shape_cast %256 : vector<8xf32> to vector<8x1xf32>
      %258 = math.log %257 : vector<8x1xf32>
      %259 = arith.addf %252, %258 : vector<8x1xf32>
      %c0_58 = arith.constant 0 : index
      %c0_59 = arith.constant 0 : index
      %260 = vector.load %arg6[%c0_58, %c0_59] : memref<8x1xf32, #tpu.memory_space<vmem>>, vector<8x1xf32>
      tpu.vector_store %arg6[%c0_58, %c0_59], %259 {strides = array<i32>} : memref<8x1xf32, #tpu.memory_space<vmem>>, vector<8x1xf32>,
    } else {
    }
    return
  }
  func.func @transform_0(%arg0: i32, %arg1: i32) -> (i32, i32, i32) {
    %c0_i32 = arith.constant 0 : i32
    %c0_i32_0 = arith.constant 0 : i32
    return %arg1, %arg0, %c0_i32 : i32, i32, i32
  }
  func.func @transform_1(%arg0: i32, %arg1: i32) -> (i32, i32) {
    %c0_i32 = arith.constant 0 : i32
    %c0_i32_0 = arith.constant 0 : i32
    return %arg0, %c0_i32 : i32, i32
  }
  func.func @transform_2(%arg0: i32, %arg1: i32) -> (i32, i32) {
    %c0_i32 = arith.constant 0 : i32
    %c0_i32_0 = arith.constant 0 : i32
    return %arg0, %c0_i32 : i32, i32
  }
  func.func @transform_3(%arg0: i32, %arg1: i32) -> (i32, i32) {
    %c0_i32 = arith.constant 0 : i32
    %c0_i32_0 = arith.constant 0 : i32
    return %arg0, %c0_i32 : i32, i32
  }
  func.func @transform_4(%arg0: i32, %arg1: i32) -> (i32, i32) {
    %c0_i32 = arith.constant 0 : i32
    %c0_i32_0 = arith.constant 0 : i32
    return %arg0, %c0_i32 : i32, i32
  }
}

</mosaic_0001>

<bundles_post_ra>
// kernel: tpu_custom_call.1
= control target key start
LH: loop header
LB: loop body
LE: loop exit
PB: predicated region body
PF: predicated region fallthrough
CT: control target
= control target key end

     0   :  { %9 = vsyncpa [#allocation4], 0  ;;  %s1262_s0 = inlined_call_operand.hbm [shape: f32[16,8,128], index: 0, kind: input, shape index: {}]   ;;  %s1263_s1 = inlined_call_operand.vmem [shape: f32[8,128], index: 1, kind: input, shape index: {}]   ;;  %s1264_s2 = inlined_call_operand.hbm [shape: f32[8,128], index: 2, kind: input, shape index: {}]   ;;  %s1265_s3 = inlined_call_operand.vmem [shape: s32[8,1], index: 3, kind: input, shape index: {}]   ;;  %s1266_s4 = inlined_call_operand.vmem [shape: f32[8,1], index: 4, kind: output, shape index: {}]  }
   0x1   :  { %11 = vsyncpa [#allocation4 + $0x1], 0 }
   0x2   :  { %12 = vsyncpa [#allocation6], 0  ;;  %s1056_s15 = smov 0   ;;  %s1058_s16 = smov 0  }
   0x3   :  { %s1060_s17 = smov 0   ;;  %s1062_s18 = smov 0  }
   0x4   :  { %s1064_s19 = smov 0   ;;  %s1066_s20 = smov 0  }
   0x5 LB: > { %s745_s21 = sadd.s32 4294967295, %s1021_s20   ;;  %s39_s22 = sadd.s32 1, %s1009_s17  ;;  %s1021_s20 = sphi %s1066_s20, %s18_s20   ;;  %s1017_s19 = sphi %s1064_s19, %s1280_s19   ;;  %s1013_s18 = sphi %s1062_s18, %s1279_s18   ;;  %s1009_s17 = sphi %s1060_s17, %s1278_s17   ;;  %s1005_s16 = sphi %s1058_s16, %s1277_s16   ;;  %s1001_s15 = sphi %s1056_s15, %s1276_s15  }
   0x6   : > { %p46_p0 = scmp.ne.s32.totalorder %s1009_s17, %s1005_s16  ;;  %p47_p1 = scmp.eq.s32.totalorder %s1021_s20, 0 }
   0x7   : > { %p52_p2 = scmp.ne.s32.totalorder %s1005_s16, %s1001_s15  ;;  %p1090_p3 = scmp.eq.s32.totalorder %s745_s21, 0 }
   0x8   : > { %p48_p4 = por %p47_p1, %p46_p0  ;;  %p746_p5 = scmp.ge.s32.totalorder %s1021_s20, 1 }
   0x9   : > { %p1097_p6 = por %p1090_p3, %p52_p2  ;;  %p167_p7 = scmp.lt.s32.totalorder %s1021_s20, 3 }
   0xa   : > { %s1023_s26 = smov [#allocation5]   ;;  %p786_p10 = scmp.lt.s32.totalorder %s1021_s20, 2 }
   0xb   : > { %s1270_s24 = scalar_select %p1097_p6, 1, 0 }
   0xc   : > { %p1102_p8 = pnand %p746_p5, %p167_p7  ;;  %s189_s27 = sshll.u32 %s1023_s26, 4  ;;  %s190_s27 = int_to_ptr.vmem [resolvable:$true] %s189_s27 }
   0xd   : > { %s207_s28 = sand.u32 1, %s1009_s17   ;;  %p1112_p12 = pnand %p786_p10, %p48_p4 }
   0xe   : > { %s1271_s25 = scalar_select %p1102_p8, 1, 0 }
   0xf   : > { %p777_p9 = pneg %p1102_p8  ;;  %s924_s30 = scalar_lea.vmem %s190_s27, 128 }
  0x10   : > { %p925_p0 = scmp.ne.s32.totalorder %s190_s27, %s924_s30  ;;  %p932_p5 = scmp.lt.s32.totalorder %s190_s27, %s190_s27 }
  0x11   : > { %p778_p11 = pnand %p777_p9, %p1090_p3  ;;  %p933_p7 = scmp.lt.s32.totalorder %s924_s30, %s924_s30 }
  0x13   : > { %p915_p13 = pneg %p778_p11  ;;  %p934_p6 = por %p933_p7, %p932_p5 }
  0x15   : > { %p927_p1 = pnand %p925_p0, %p915_p13 }
  0x17   : > { %p928_p2 = pneg %p927_p1 }
  0x19   : > { %p935_p8 = pnand %p934_p6, %p928_p2 }
  0x1b   : > { %938 = shalt.err (!%p935_p8)
}
  0x1c   : > { %780 = dma.hbm_to_vmem [thread:$0]  (!%p778_p11), %s1264_s2, 128, %s190_s27, [#allocation6]  }
  0x1d   : > { %s27_s7 = sadd.s32 1, %s1017_s19  ;;  %s751_s8 = sshll.u32 %s207_s28, 6 }
  0x1e   : > { %p28_p4 = scmp.ge.s32.totalorder %s27_s7, 2  ;;  %s770_s9 = sshll.u32 %s1017_s19, 10 }
  0x1f   : > { %s211_s10 = scalar_lea.vmem [#allocation3], %s751_s8  ;;  %s218_s14 = scalar_lea.hbm %s1262_s0, %s770_s9 }
  0x20   : > { %s219_s11 = sshll.u32 %s211_s10, 4  ;;  %s1282_s7 = smov (%p28_p4, %s27_s7), 0  ;;  %s220_s11 = int_to_ptr.vmem [resolvable:$true] %s219_s11 }
  0x21   : > { %s34_s15 = ssub.s32 %s1017_s19, %s1282_s7  ;;  %s208_s26 = scalar_lea.sflag [#allocation4], %s207_s28 }
  0x22   : > { %p1128_p6 = scmp.eq.s32.totalorder %s34_s15, 0  ;;  %p941_p8 = pneg %p1112_p12 }
  0x23   : > { %s952_s27 = scalar_lea.vmem %s220_s11, 1024  ;;  %s1024_s30 = smov [#allocation3]  }
  0x24   : > { %p953_p9 = scmp.ne.s32.totalorder %s220_s11, %s952_s27  ;;  %s957_s5 = sshll.u32 %s1024_s30, 4  ;;  %s958_s5 = int_to_ptr.vmem [resolvable:$false] %s957_s5 }
  0x25   : > { %s959_s6 = scalar_lea.vmem %s958_s5, 2048  ;;  %p960_p13 = scmp.lt.s32.totalorder %s220_s11, %s958_s5 }
  0x26   : > { %p955_p10 = pnand %p953_p9, %p941_p8  ;;  %p961_p0 = scmp.lt.s32.totalorder %s959_s6, %s952_s27 }
  0x28   : > { %p956_p11 = pneg %p955_p10  ;;  %p962_p1 = por %p961_p0, %p960_p13 }
  0x2a   : > { %p963_p2 = pnand %p962_p1, %p956_p11 }
  0x2c   : > { %966 = shalt.err (!%p963_p2)
}
  0x2d   : > { %s1025_s8 = smov 128   ;;  %s1026_s28 = smov 8  }
  0x2e   : > { %784 = dma.hbm_to_vmem [thread:$0]  (!%p1112_p12), %s218_s14, 1024, %s220_s11, %s208_s26, %s1025_s8, %s1025_s8, %s1026_s28  }
  0x2f   : > { %s1141_s9 = scalar_select %p1128_p6, %s1009_s17, %s39_s22  }
  0x30   : > { %p1274_p5 = scmp.ne.s32.totalorder %s1271_s25, 0 }
  0x31   : > { %s233_s10 = sand.u32 (!%p1274_p5), 1, %s1005_s16   ;;  %p1275_p7 = scmp.ne.s32.totalorder (!%p1274_p5), %s1270_s24, 0 }
  0x32   : > { %231 = sbr.rel (%p1274_p5) target bundleno = 1716 (0x6b4), region = 36  ;;  %s755_s12 = sshll.u32 (!%p1274_p5), %s233_s10, 6 }
  0x33   : > { %s234_s13 = scalar_lea.sflag (!%p1274_p5), [#allocation4], %s233_s10  ;;  %s1146_s15 = scalar_lea.vmem (!%p1274_p5), [#allocation3], %s755_s12 }
  0x37   : > { %992 = dma.done.wait (%p1275_p7), %s234_s13, 1024  }
  0x38   : > { %994 = vsyncadd (%p1275_p7), %s234_s13, 4294966272 }
  0x39   : > { %996 = dma.done.wait (%p1090_p3), [#allocation6], 128  }
  0x3a   : > { %998 = vsyncadd (%p1090_p3), [#allocation6], 4294967168  ;;  %v286_v0 = vlaneseq  ;;  %p757_p12 = scmp.ne.s32.totalorder %s1013_s18, 0 }
  0x3c   : > { %v287_v1 = vand.u32 127, %v286_v0  ;;  %291 = sbr.rel (%p757_p12) target bundleno = 68 (0x44), region = 48 }
  0x41   : > { %vm292_vm0 = vcmp.lt.s32.totalorder %v287_v1, 2  ;;  %v293_v2 = vld [vmem:[%s1146_s15] sm:$0xff] }
  0x42   : > { %v294_v3 = vsel %vm292_vm0, %v293_v2, -1e+30 }
  0x43   : > { %295 = vst [vmem:[#allocation2] sm:$0xff] %v294_v3 }
  0x44 PF: > { %s1027_s22 = smov 1   ;;  %v1028_v5 = vmov 0   ;;  %s1161_s23 = sshll.u32 %s1013_s18, 3  ;;  %v1166_v6 = vld [vmem:[%s1265_s3] sm:$0xff]  ;;  %vm298_vm4 = vcmp.ge.s32.totalorder %v287_v1, 1  ;;  %v324_v35 = vld [vmem:[%s1146_s15] sm:$0xff] }
  0x45   : > { %843 = vset.pattern.permute.xlu1 %v1028_v5  ;;  %p326_p3 = scmp.ge.s32.totalorder %s1161_s23, 1  ;;  %v327_v7 = vstv %s1161_s23  ;;  %844 = vset.pattern.permute.xlu0 %v1028_v5  ;;  %s1029_s11 = smov 2   ;;  %v1030_v10 = vmov -1e+30   ;;  %v1180_v14 = vld [vmem:[%s1263_s1] sm:$0xff]  ;;  %v759_v61 = vld [vmem:[%s1146_s15 + $0x8] sm:$0xff] }
  0x46   : > { %vm328_vm1 = vcmp.lt.s32.totalorder %v327_v7, %v1166_v6  ;;  %v1174_v11 = vsel %vm298_vm4, 0.0, %v1030_v10  ;;  %s339_s26 = sadd.s32 1, %s1161_s23  ;;  %s378_s30 = sadd.s32 2, %s1161_s23 }
  0x47   : > { %s329_s29 = scalar_select %p326_p3, 1, 0  ;;  %v366_v31 = vstv %s339_s26  ;;  %v405_v58 = vstv %s378_s30 }
  0x48   : > { %p365_p4 = scmp.ge.s32.totalorder %s339_s26, 1  ;;  %vm367_vm5 = vcmp.lt.s32.totalorder %v366_v31, %v1166_v6  ;;  %p404_p6 = scmp.ge.s32.totalorder %s378_s30, 1  ;;  %vm406_vm9 = vcmp.lt.s32.totalorder %v405_v58, %v1166_v6 }
  0x49   : > { %v330_v8 = vstv %s329_s29  ;;  %s417_s5 = sadd.s32 3, %s1161_s23  ;;  %s456_s28 = sadd.s32 4, %s1161_s23 }
  0x4a   : > { %v301_v4 = vld [vmem:[#allocation2] sm:$0xff]  ;;  %vm331_vm2 = vcmp.eq.s32.totalorder %v330_v8, 1  ;;  %s368_s27 = scalar_select %p365_p4, 1, 0  ;;  %v444_v0 = vstv %s417_s5 }
  0x4b   : > { %302 = vrot.lane.b32.xlu0 %v301_v4, %s1027_s22  ;;  %vm332_vm3 = vmand %vm331_vm2, %vm328_vm1  ;;  %s407_s6 = scalar_select %p404_p6, 1, 0  ;;  %vm445_vm13 = vcmp.lt.s32.totalorder %v444_v0, %v1166_v6 }
  0x4c   : > { %v333_v9 = vsel %vm332_vm3, 1, %v1028_v5  ;;  %v369_v32 = vstv %s368_s27  ;;  %p443_p8 = scmp.ge.s32.totalorder %s417_s5, 1  ;;  %p482_p9 = scmp.ge.s32.totalorder %s456_s28, 1 }
  0x4d   : > { %335 = vperm.xlu1 %843, %v333_v9   ;;  %vm370_vm6 = vcmp.eq.s32.totalorder %v369_v32, 1  ;;  %v408_v59 = vstv %s407_s6  ;;  %s495_s12 = sadd.s32 5, %s1161_s23  ;;  %s534_s24 = sadd.s32 6, %s1161_s23 }
  0x4e   : > { %vm371_vm8 = vmand %vm370_vm6, %vm367_vm5  ;;  %s446_s8 = scalar_select %p443_p8, 1, 0  ;;  %vm409_vm10 = vcmp.eq.s32.totalorder %v408_v59, 1 }
  0x4f   : > { %305 = vrot.lane.b32.xlu0 %v301_v4, %s1029_s11  ;;  %v372_v39 = vsel %vm371_vm8, 1, %v1028_v5  ;;  %vm410_vm12 = vmand %vm409_vm10, %vm406_vm9  ;;  %s485_s10 = scalar_select %p482_p9, 1, 0 }
  0x50   : > { %v447_v1 = vstv %s446_s8  ;;  %p521_p10 = scmp.ge.s32.totalorder %s495_s12, 1  ;;  %p560_p11 = scmp.ge.s32.totalorder %s534_s24, 1 }
  0x51   : > { %vm448_vm14 = vcmp.eq.s32.totalorder %v447_v1, 1  ;;  %s573_s29 = sadd.s32 7, %s1161_s23  ;;  %p766_p0 = scmp.ne.s32.totalorder %s1013_s18, 1 }
  0x52   : > { %vm449_vm15 = vmand %vm448_vm14, %vm445_vm13  ;;  %s524_s13 = scalar_select %p521_p10, 1, 0 }
  0x53   : > { %v450_v7 = vsel %vm449_vm15, 1, %v1028_v5  ;;  %s563_s25 = scalar_select %p560_p11, 1, 0 }
  0x54   : > { %p599_p13 = scmp.ge.s32.totalorder %s573_s29, 1 }
  0x56   : > { %s602_s14 = scalar_select %p599_p13, 1, 0 }
  0xbd   : > { %v303_v12 = vpop.permute.xlu0 %302 }
  0xbe   : > { %v304_v13 = vadd.f32 %v303_v12, %v1174_v11 }
  0xc0   : > { %v308_v16 = vmax.f32 %v301_v4, %v304_v13 }
  0xc1   : > { %v306_v15 = vpop.permute.xlu0 %305 }
  0xc2   : > { %v307_v17 = vadd.f32 %v306_v15, %v1180_v14 }
  0xc4   : > { %v309_v18 = vmax.f32 %v308_v16, %v307_v17 }
  0xc6   : > { %v310_v19 = vsub.f32 %v301_v4, %v309_v18  ;;  %v313_v20 = vsub.f32 %v304_v13, %v309_v18  ;;  %v317_v21 = vsub.f32 %v307_v17, %v309_v18 }
  0xc8   : > { %v311_v22 = vmul.f32 1.442695, %v310_v19  ;;  %v314_v23 = vmul.f32 1.442695, %v313_v20  ;;  %v318_v24 = vmul.f32 1.442695, %v317_v21  ;;  %v336_v33 = vpop.permute.xlu1 %335 }
  0xc9   : > { %vm337_vm7 = vcmp.eq.s32.totalorder %v336_v33, 1 }
  0xca   : > { %845 = vpow2.f32 %v311_v22 }
  0xcb   : > { %847 = vpow2.f32 %v314_v23 }
  0xcc   : > { %849 = vpow2.f32 %v318_v24 }
  0xd7   : > { %v846_v25 = vpop.eup %845 }
  0xd8   : > { %v848_v26 = vpop.eup %847 }
  0xd9   : > { %v316_v27 = vadd.f32 %v848_v26, %v846_v25  ;;  %v850_v28 = vpop.eup %849 }
  0xdb   : > { %v320_v29 = vadd.f32 %v850_v28, %v316_v27 }
  0xdd   : > { %851 = vlog2.f32 %v320_v29  ;;  %v760_v29 = vld [vmem:[%s1146_s15 + $0x10] sm:$0xff] }
  0xea   : > { %v852_v30 = vpop.eup %851 }
  0xeb   : > { %v322_v34 = vmul.f32 0.6931472, %v852_v30 }
  0xed   : > { %v323_v36 = vadd.f32 %v322_v34, %v309_v18 }
  0xef   : > { %v325_v37 = vadd.f32 %v324_v35, %v323_v36 }
  0xf1   : > { %v338_v38 = vsel %vm337_vm7, %v325_v37, %v301_v4  ;;  %v411_v4 = vsel %vm410_vm12, 1, %v1028_v5 }
  0xf2   : > { %343 = vrot.lane.b32.xlu0 %v338_v38, %s1029_s11  ;;  %340 = vrot.lane.b32.xlu1 %v338_v38, %s1027_s22 }
  0xf6   : > { %374 = vperm.xlu1 %843, %v372_v39  }
 0x164   : > { %v344_v40 = vpop.permute.xlu0 %343  ;;  %v341_v41 = vpop.permute.xlu1 %340 }
 0x165   : > { %v342_v42 = vadd.f32 %v341_v41, %v1174_v11  ;;  %v345_v43 = vadd.f32 %v344_v40, %v1180_v14 }
 0x167   : > { %v346_v44 = vmax.f32 %v338_v38, %v342_v42 }
 0x169   : > { %v347_v45 = vmax.f32 %v346_v44, %v345_v43 }
 0x16b   : > { %v348_v46 = vsub.f32 %v338_v38, %v347_v45  ;;  %v351_v47 = vsub.f32 %v342_v42, %v347_v45  ;;  %v355_v48 = vsub.f32 %v345_v43, %v347_v45 }
 0x16d   : > { %v349_v49 = vmul.f32 1.442695, %v348_v46  ;;  %v352_v50 = vmul.f32 1.442695, %v351_v47  ;;  %v356_v51 = vmul.f32 1.442695, %v355_v48 }
 0x16f   : > { %853 = vpow2.f32 %v349_v49 }
 0x170   : > { %855 = vpow2.f32 %v352_v50 }
 0x171   : > { %857 = vpow2.f32 %v356_v51  ;;  %v375_v63 = vpop.permute.xlu1 %374 }
 0x172   : > { %vm376_vm11 = vcmp.eq.s32.totalorder %v375_v63, 1 }
 0x17c   : > { %v854_v52 = vpop.eup %853 }
 0x17d   : > { %v856_v53 = vpop.eup %855 }
 0x17e   : > { %v354_v54 = vadd.f32 %v856_v53, %v854_v52  ;;  %v858_v55 = vpop.eup %857  ;;  %v483_v52 = vstv %s456_s28  ;;  %v486_v53 = vstv %s485_s10 }
 0x17f   : > { %vm484_vm1 = vcmp.lt.s32.totalorder %v483_v52, %v1166_v6  ;;  %vm487_vm2 = vcmp.eq.s32.totalorder %v486_v53, 1 }
 0x180   : > { %v358_v56 = vadd.f32 %v858_v55, %v354_v54  ;;  %v761_v55 = vld [vmem:[%s1146_s15 + $0x18] sm:$0xff]  ;;  %vm488_vm4 = vmand %vm487_vm2, %vm484_vm1 }
 0x182   : > { %859 = vlog2.f32 %v358_v56 }
 0x18f   : > { %v860_v57 = vpop.eup %859 }
 0x190   : > { %v360_v60 = vmul.f32 0.6931472, %v860_v57 }
 0x192   : > { %v361_v62 = vadd.f32 %v360_v60, %v347_v45  ;;  %v489_v60 = vsel %vm488_vm4, 1, %v1028_v5 }
 0x194   : > { %v364_v2 = vadd.f32 %v759_v61, %v361_v62 }
 0x196   : > { %v377_v3 = vsel %vm376_vm11, %v364_v2, %v338_v38 }
 0x197   : > { %382 = vrot.lane.b32.xlu1 %v377_v3, %s1029_s11  ;;  %379 = vrot.lane.b32.xlu0 %v377_v3, %s1027_s22 }
 0x19b   : > { %413 = vperm.xlu0 %844, %v411_v4  }
 0x19f   : > { %452 = vperm.xlu0 %844, %v450_v7  }
 0x209   : > { %v383_v8 = vpop.permute.xlu1 %382  ;;  %v380_v9 = vpop.permute.xlu0 %379 }
 0x20a   : > { %v381_v10 = vadd.f32 %v380_v9, %v1174_v11  ;;  %v384_v12 = vadd.f32 %v383_v8, %v1180_v14 }
 0x20c   : > { %v385_v13 = vmax.f32 %v377_v3, %v381_v10 }
 0x20e   : > { %v386_v15 = vmax.f32 %v385_v13, %v384_v12 }
 0x210   : > { %v387_v16 = vsub.f32 %v377_v3, %v386_v15  ;;  %v390_v17 = vsub.f32 %v381_v10, %v386_v15  ;;  %v394_v18 = vsub.f32 %v384_v12, %v386_v15 }
 0x212   : > { %v388_v19 = vmul.f32 1.442695, %v387_v16  ;;  %v391_v20 = vmul.f32 1.442695, %v390_v17  ;;  %v395_v21 = vmul.f32 1.442695, %v394_v18 }
 0x214   : > { %861 = vpow2.f32 %v388_v19  ;;  %v522_v19 = vstv %s495_s12 }
 0x215   : > { %863 = vpow2.f32 %v391_v20  ;;  %v525_v20 = vstv %s524_s13  ;;  %vm523_vm5 = vcmp.lt.s32.totalorder %v522_v19, %v1166_v6 }
 0x216   : > { %865 = vpow2.f32 %v395_v21  ;;  %v414_v31 = vpop.permute.xlu0 %413  ;;  %vm526_vm6 = vcmp.eq.s32.totalorder %v525_v20, 1 }
 0x217   : > { %vm415_vm0 = vcmp.eq.s32.totalorder %v414_v31, 1  ;;  %vm527_vm8 = vmand %vm526_vm6, %vm523_vm5 }
 0x21a   : > { %v453_v56 = vpop.permute.xlu0 %452 }
 0x21b   : > { %vm454_vm3 = vcmp.eq.s32.totalorder %v453_v56, 1 }
 0x221   : > { %v862_v22 = vpop.eup %861 }
 0x222   : > { %v864_v23 = vpop.eup %863 }
 0x223   : > { %v393_v24 = vadd.f32 %v864_v23, %v862_v22  ;;  %v866_v25 = vpop.eup %865  ;;  %v762_v22 = vld [vmem:[%s1146_s15 + $0x20] sm:$0xff] }
 0x225   : > { %v397_v26 = vadd.f32 %v866_v25, %v393_v24 }
 0x227   : > { %867 = vlog2.f32 %v397_v26 }
 0x234   : > { %v868_v27 = vpop.eup %867 }
 0x235   : > { %v399_v28 = vmul.f32 0.6931472, %v868_v27  ;;  %v528_v27 = vsel %vm527_vm8, 1, %v1028_v5 }
 0x237   : > { %v400_v30 = vadd.f32 %v399_v28, %v386_v15 }
 0x239   : > { %v403_v32 = vadd.f32 %v760_v29, %v400_v30 }
 0x23b   : > { %v416_v33 = vsel %vm415_vm0, %v403_v32, %v377_v3 }
 0x23c   : > { %418 = vrot.lane.b32.xlu1 %v416_v33, %s1027_s22 }
 0x240   : > { %421 = vrot.lane.b32.xlu1 %v416_v33, %s1029_s11 }
 0x2ae   : > { %v419_v34 = vpop.permute.xlu1 %418 }
 0x2af   : > { %v420_v35 = vadd.f32 %v419_v34, %v1174_v11 }
 0x2b1   : > { %v424_v37 = vmax.f32 %v416_v33, %v420_v35 }
 0x2b2   : > { %v422_v36 = vpop.permute.xlu1 %421 }
 0x2b3   : > { %v423_v38 = vadd.f32 %v422_v36, %v1180_v14 }
 0x2b5   : > { %v425_v39 = vmax.f32 %v424_v37, %v423_v38 }
 0x2b7   : > { %v426_v40 = vsub.f32 %v416_v33, %v425_v39  ;;  %v429_v41 = vsub.f32 %v420_v35, %v425_v39  ;;  %v433_v42 = vsub.f32 %v423_v38, %v425_v39 }
 0x2b9   : > { %v427_v43 = vmul.f32 1.442695, %v426_v40  ;;  %v430_v44 = vmul.f32 1.442695, %v429_v41  ;;  %v434_v45 = vmul.f32 1.442695, %v433_v42 }
 0x2bb   : > { %869 = vpow2.f32 %v427_v43 }
 0x2bc   : > { %871 = vpow2.f32 %v430_v44 }
 0x2bd   : > { %873 = vpow2.f32 %v434_v45 }
 0x2c8   : > { %v870_v46 = vpop.eup %869 }
 0x2c9   : > { %v872_v47 = vpop.eup %871 }
 0x2ca   : > { %v432_v48 = vadd.f32 %v872_v47, %v870_v46  ;;  %v874_v49 = vpop.eup %873  ;;  %v561_v46 = vstv %s534_s24  ;;  %v564_v47 = vstv %s563_s25 }
 0x2cb   : > { %vm562_vm9 = vcmp.lt.s32.totalorder %v561_v46, %v1166_v6  ;;  %vm565_vm10 = vcmp.eq.s32.totalorder %v564_v47, 1 }
 0x2cc   : > { %v436_v50 = vadd.f32 %v874_v49, %v432_v48  ;;  %v763_v49 = vld [vmem:[%s1146_s15 + $0x28] sm:$0xff]  ;;  %vm566_vm12 = vmand %vm565_vm10, %vm562_vm9 }
 0x2ce   : > { %875 = vlog2.f32 %v436_v50 }
 0x2db   : > { %v876_v51 = vpop.eup %875 }
 0x2dc   : > { %v438_v54 = vmul.f32 0.6931472, %v876_v51 }
 0x2de   : > { %v439_v57 = vadd.f32 %v438_v54, %v425_v39  ;;  %v567_v54 = vsel %vm566_vm12, 1, %v1028_v5 }
 0x2e0   : > { %v442_v58 = vadd.f32 %v761_v55, %v439_v57 }
 0x2e2   : > { %v455_v59 = vsel %vm454_vm3, %v442_v58, %v416_v33 }
 0x2e3   : > { %460 = vrot.lane.b32.xlu0 %v455_v59, %s1029_s11  ;;  %457 = vrot.lane.b32.xlu1 %v455_v59, %s1027_s22 }
 0x2e7   : > { %491 = vperm.xlu1 %843, %v489_v60  }
 0x355   : > { %v461_v61 = vpop.permute.xlu0 %460  ;;  %v458_v62 = vpop.permute.xlu1 %457 }
 0x356   : > { %v459_v63 = vadd.f32 %v458_v62, %v1174_v11  ;;  %v462_v0 = vadd.f32 %v461_v61, %v1180_v14 }
 0x358   : > { %v463_v1 = vmax.f32 %v455_v59, %v459_v63 }
 0x35a   : > { %v464_v2 = vmax.f32 %v463_v1, %v462_v0 }
 0x35c   : > { %v465_v3 = vsub.f32 %v455_v59, %v464_v2  ;;  %v468_v4 = vsub.f32 %v459_v63, %v464_v2  ;;  %v472_v7 = vsub.f32 %v462_v0, %v464_v2 }
 0x35e   : > { %v466_v8 = vmul.f32 1.442695, %v465_v3  ;;  %v469_v9 = vmul.f32 1.442695, %v468_v4  ;;  %v473_v10 = vmul.f32 1.442695, %v472_v7 }
 0x360   : > { %877 = vpow2.f32 %v466_v8 }
 0x361   : > { %879 = vpow2.f32 %v469_v9 }
 0x362   : > { %881 = vpow2.f32 %v473_v10  ;;  %v492_v24 = vpop.permute.xlu1 %491 }
 0x363   : > { %vm493_vm7 = vcmp.eq.s32.totalorder %v492_v24, 1 }
 0x36d   : > { %v878_v12 = vpop.eup %877 }
 0x36e   : > { %v880_v13 = vpop.eup %879 }
 0x36f   : > { %v471_v15 = vadd.f32 %v880_v13, %v878_v12  ;;  %v882_v16 = vpop.eup %881  ;;  %v600_v12 = vstv %s573_s29  ;;  %v603_v13 = vstv %s602_s14 }
 0x370   : > { %vm601_vm13 = vcmp.lt.s32.totalorder %v600_v12, %v1166_v6  ;;  %vm604_vm14 = vcmp.eq.s32.totalorder %v603_v13, 1 }
 0x371   : > { %v475_v17 = vadd.f32 %v882_v16, %v471_v15  ;;  %v764_v16 = vld [vmem:[%s1146_s15 + $0x30] sm:$0xff]  ;;  %vm605_vm0 = vmand %vm604_vm14, %vm601_vm13 }
 0x373   : > { %883 = vlog2.f32 %v475_v17 }
 0x380   : > { %v884_v18 = vpop.eup %883 }
 0x381   : > { %v477_v21 = vmul.f32 0.6931472, %v884_v18 }
 0x383   : > { %v478_v23 = vadd.f32 %v477_v21, %v464_v2  ;;  %v606_v21 = vsel %vm605_vm0, 1, %v1028_v5 }
 0x385   : > { %v481_v25 = vadd.f32 %v762_v22, %v478_v23 }
 0x387   : > { %v494_v26 = vsel %vm493_vm7, %v481_v25, %v455_v59 }
 0x388   : > { %499 = vrot.lane.b32.xlu1 %v494_v26, %s1029_s11  ;;  %496 = vrot.lane.b32.xlu0 %v494_v26, %s1027_s22 }
 0x38c   : > { %530 = vperm.xlu0 %844, %v528_v27  }
 0x3fa   : > { %v500_v28 = vpop.permute.xlu1 %499  ;;  %v497_v29 = vpop.permute.xlu0 %496 }
 0x3fb   : > { %v498_v30 = vadd.f32 %v497_v29, %v1174_v11  ;;  %v501_v31 = vadd.f32 %v500_v28, %v1180_v14 }
 0x3fd   : > { %v502_v32 = vmax.f32 %v494_v26, %v498_v30 }
 0x3ff   : > { %v503_v33 = vmax.f32 %v502_v32, %v501_v31 }
 0x401   : > { %v504_v34 = vsub.f32 %v494_v26, %v503_v33  ;;  %v507_v35 = vsub.f32 %v498_v30, %v503_v33  ;;  %v511_v36 = vsub.f32 %v501_v31, %v503_v33 }
 0x403   : > { %v505_v37 = vmul.f32 1.442695, %v504_v34  ;;  %v508_v38 = vmul.f32 1.442695, %v507_v35  ;;  %v512_v39 = vmul.f32 1.442695, %v511_v36 }
 0x405   : > { %885 = vpow2.f32 %v505_v37  ;;  %v765_v37 = vld [vmem:[%s1146_s15 + $0x38] sm:$0xff] }
 0x406   : > { %887 = vpow2.f32 %v508_v38 }
 0x407   : > { %889 = vpow2.f32 %v512_v39  ;;  %v531_v51 = vpop.permute.xlu0 %530 }
 0x408   : > { %vm532_vm11 = vcmp.eq.s32.totalorder %v531_v51, 1 }
 0x412   : > { %v886_v40 = vpop.eup %885 }
 0x413   : > { %v888_v41 = vpop.eup %887 }
 0x414   : > { %v510_v42 = vadd.f32 %v888_v41, %v886_v40  ;;  %v890_v43 = vpop.eup %889 }
 0x416   : > { %v514_v44 = vadd.f32 %v890_v43, %v510_v42 }
 0x418   : > { %891 = vlog2.f32 %v514_v44 }
 0x425   : > { %v892_v45 = vpop.eup %891 }
 0x426   : > { %v516_v48 = vmul.f32 0.6931472, %v892_v45 }
 0x428   : > { %v517_v50 = vadd.f32 %v516_v48, %v503_v33 }
 0x42a   : > { %v520_v52 = vadd.f32 %v763_v49, %v517_v50 }
 0x42c   : > { %v533_v53 = vsel %vm532_vm11, %v520_v52, %v494_v26 }
 0x42d   : > { %538 = vrot.lane.b32.xlu0 %v533_v53, %s1029_s11  ;;  %535 = vrot.lane.b32.xlu1 %v533_v53, %s1027_s22 }
 0x431   : > { %569 = vperm.xlu1 %843, %v567_v54  }
 0x49f   : > { %v539_v55 = vpop.permute.xlu0 %538  ;;  %v536_v56 = vpop.permute.xlu1 %535 }
 0x4a0   : > { %v537_v57 = vadd.f32 %v536_v56, %v1174_v11  ;;  %v540_v58 = vadd.f32 %v539_v55, %v1180_v14 }
 0x4a2   : > { %v541_v59 = vmax.f32 %v533_v53, %v537_v57 }
 0x4a4   : > { %v542_v60 = vmax.f32 %v541_v59, %v540_v58 }
 0x4a6   : > { %v543_v61 = vsub.f32 %v533_v53, %v542_v60  ;;  %v546_v62 = vsub.f32 %v537_v57, %v542_v60  ;;  %v550_v63 = vsub.f32 %v540_v58, %v542_v60 }
 0x4a8   : > { %v544_v0 = vmul.f32 1.442695, %v543_v61  ;;  %v547_v1 = vmul.f32 1.442695, %v546_v62  ;;  %v551_v2 = vmul.f32 1.442695, %v550_v63 }
 0x4aa   : > { %893 = vpow2.f32 %v544_v0 }
 0x4ab   : > { %895 = vpow2.f32 %v547_v1 }
 0x4ac   : > { %897 = vpow2.f32 %v551_v2  ;;  %v570_v18 = vpop.permute.xlu1 %569 }
 0x4ad   : > { %vm571_vm15 = vcmp.eq.s32.totalorder %v570_v18, 1 }
 0x4b7   : > { %v894_v3 = vpop.eup %893 }
 0x4b8   : > { %v896_v4 = vpop.eup %895 }
 0x4b9   : > { %v549_v7 = vadd.f32 %v896_v4, %v894_v3  ;;  %v898_v8 = vpop.eup %897 }
 0x4bb   : > { %v553_v9 = vadd.f32 %v898_v8, %v549_v7 }
 0x4bd   : > { %899 = vlog2.f32 %v553_v9 }
 0x4ca   : > { %v900_v10 = vpop.eup %899 }
 0x4cb   : > { %v555_v15 = vmul.f32 0.6931472, %v900_v10 }
 0x4cd   : > { %v556_v17 = vadd.f32 %v555_v15, %v542_v60 }
 0x4cf   : > { %v559_v19 = vadd.f32 %v764_v16, %v556_v17 }
 0x4d1   : > { %v572_v20 = vsel %vm571_vm15, %v559_v19, %v533_v53 }
 0x4d2   : > { %577 = vrot.lane.b32.xlu1 %v572_v20, %s1029_s11  ;;  %574 = vrot.lane.b32.xlu0 %v572_v20, %s1027_s22 }
 0x4d6   : > { %608 = vperm.xlu0 %844, %v606_v21  }
 0x544   : > { %v578_v22 = vpop.permute.xlu1 %577  ;;  %v575_v23 = vpop.permute.xlu0 %574 }
 0x545   : > { %v576_v24 = vadd.f32 %v575_v23, %v1174_v11  ;;  %v579_v25 = vadd.f32 %v578_v22, %v1180_v14 }
 0x547   : > { %v580_v26 = vmax.f32 %v572_v20, %v576_v24 }
 0x549   : > { %v581_v6 = vmax.f32 %v580_v26, %v579_v25 }
 0x54b   : > { %v582_v27 = vsub.f32 %v572_v20, %v581_v6  ;;  %v585_v28 = vsub.f32 %v576_v24, %v581_v6  ;;  %v589_v29 = vsub.f32 %v579_v25, %v581_v6 }
 0x54d   : > { %v583_v30 = vmul.f32 1.442695, %v582_v27  ;;  %v586_v31 = vmul.f32 1.442695, %v585_v28  ;;  %v590_v32 = vmul.f32 1.442695, %v589_v29 }
 0x54f   : > { %901 = vpow2.f32 %v583_v30 }
 0x550   : > { %903 = vpow2.f32 %v586_v31 }
 0x551   : > { %905 = vpow2.f32 %v590_v32  ;;  %v609_v39 = vpop.permute.xlu0 %608 }
 0x552   : > { %vm610_vm1 = vcmp.eq.s32.totalorder %v609_v39, 1 }
 0x55c   : > { %v902_v5 = vpop.eup %901 }
 0x55d   : > { %v904_v33 = vpop.eup %903 }
 0x55e   : > { %v588_v34 = vadd.f32 %v904_v33, %v902_v5  ;;  %v906_v35 = vpop.eup %905 }
 0x560   : > { %v592_v36 = vadd.f32 %v906_v35, %v588_v34 }
 0x562   : > { %907 = vlog2.f32 %v592_v36 }
 0x56f   : > { %v908_v11 = vpop.eup %907 }
 0x570   : > { %v594_v14 = vmul.f32 0.6931472, %v908_v11 }
 0x572   : > { %v595_v38 = vadd.f32 %v594_v14, %v581_v6 }
 0x573   : > { %616 = sbr.rel (%p766_p0) target bundleno = 1716 (0x6b4), region = 52 }
 0x574   : > { %v598_v40 = vadd.f32 %v765_v37, %v595_v38 }
 0x576   : > { %v611_v41 = vsel %vm610_vm1, %v598_v40, %v572_v20 }
 0x577   : > { %612 = vst [vmem:[#allocation2] sm:$0xff] %v611_v41 }
 0x578   : > { %v617_v42 = vld [vmem:[#allocation5] sm:$0xff]  ;;  %vm629_vm2 = vcmask 7168  }
 0x579   : > { %v618_v43 = vadd.f32 %v617_v42, %v611_v41 }
 0x57b   : > { %619 = vmax.xlane.f32.xlu0 %v618_v43 }
 0x604   : > { %v620_v44 = vpop.xlane.xlu0 %619 }
 0x605   : > { %v621_v45 = vsub.f32 %v618_v43, %v620_v44 }
 0x607   : > { %v622_v46 = vmul.f32 1.442695, %v621_v45 }
 0x609   : > { %909 = vpow2.f32 %v622_v46 }
 0x616   : > { %v910_v47 = vpop.eup %909 }
 0x617   : > { %624 = vadd.xlane.f32.xlu0 %v910_v47 }
 0x6a0   : > { %v625_v48 = vpop.xlane.xlu0 %624 }
 0x6a1   : > { %911 = vlog2.f32 %v625_v48 }
 0x6ae   : > { %v912_v49 = vpop.eup %911 }
 0x6af   : > { %v627_v50 = vmul.f32 0.6931472, %v912_v49 }
 0x6b1   : > { %v628_v51 = vadd.f32 %v627_v50, %v620_v44 }
 0x6b3   : > { %630 = vst.msk [vmem:[%s1266_s4] sm:$0xff] %vm629_vm2, %v628_v51 }
 0x6b4 PF: > { %s18_s20 = sadd.s32 1, %s1021_s20   ;;  %s1276_s15 = smov %s1005_s16 }
 0x6b5   : > { %p15_p1 = scmp.ge.s32.totalorder %s18_s20, 4   ;;  %s1277_s16 = smov %s1009_s17 }
 0x6b6   : > { %s1278_s17 = smov %s1141_s9  ;;  %s1279_s18 = smov %s1017_s19 }
 0x6b7   : > { %s1280_s19 = smov %s1282_s7  ;;  %17 = sbr.rel (!%p15_p1) target bundleno = 5 (0x5), region = 102 }
 0x6bc   :  { %650 = vsyncpa [#allocation4], 1 }
 0x6bd   :  { %652 = vsyncpa [#allocation4 + $0x1], 1 }
 0x6be   :  { %653 = vsyncpa [#allocation6], 1 }

</bundles_post_ra>
